<compile_context>
chip_gen: v7x
topology: tpu7x:2x2x1
jax: 0.10.0
libtpu: 0.0.40
codegen_flags: <defaults>
</compile_context>

<pallas_src>
import jax
import jax.numpy as jnp
from jax.experimental import pallas as pl
from jax.experimental.pallas import tpu as pltpu


def _round_up(x, m):
    return (x + m - 1) // m * m


def _round_down(x, m):
    return (x // m) * m


def basic_gate_kernel(b_ref, w_ref, src_ref, trg_ref, out_ref):
    # b_ref:   (1,)        SMEM   gating conv bias
    # w_ref:   (C, 1)      VMEM   gating conv weight (out_ch=1, kernel_size=1 squeezed)
    # src_ref: (1, C, Lt)  VMEM   src tile for this (batch, l-tile) grid point
    # trg_ref: (1, C, Lt)
    # out_ref: (1, C, Lt)
    src = src_ref[0].astype(jnp.float32)                 # (C, Lt)
    w = w_ref[...].astype(jnp.float32)                   # (C, 1), broadcasts over lanes
    # 1x1 conv over channels == per-column dot product:
    # VPU multiply + cross-sublane reduce (avoids an M=1 MXU matmul).
    logits = jnp.sum(src * w, axis=0, keepdims=True) + b_ref[0]    # (1, Lt)
    g = jax.nn.sigmoid(logits)                            # (1, Lt), broadcasts over C
    out_ref[0] = (trg_ref[0].astype(jnp.float32) * g).astype(out_ref.dtype)


def _vmem_capacity_bytes():
    try:
        return int(pltpu.get_tpu_info().vmem_capacity_bytes)
    except Exception:
        return 64 << 20  # conservative (v7x-safe) fallback


def _padded_col_bytes(C, dtype):
    # VMEM bytes per lane-column for a (C, Lt) tile, including sublane padding
    # (f32 -> 8 sublanes, bf16 -> 16, int8 -> 32). Makes VMEM accounting honest
    # for small C.
    itemsize = jnp.dtype(dtype).itemsize
    pack = max(1, 32 // itemsize)
    return _round_up(C, pack) * itemsize


def basic_gate(src, trg, weight, bias, *, l_tile=None, out_dtype=None):
    """src, trg: (N, C, L); weight: (1, C, 1) [Conv1d weight]; bias: (1,).

    Pass bf16 src/trg directly (no wrapper cast) to halve HBM traffic; compute
    is always f32, output dtype defaults to trg.dtype.
    """
    N, C, L = src.shape
    assert trg.shape == (N, C, L)
    assert weight.shape == (1, C, 1), "BasicGate expects Conv1d(C, 1, kernel_size=1)"
    assert bias.shape == (1,)

    if out_dtype is None:
        out_dtype = trg.dtype

    # TODO(synk): for C < 8 (f32) the (1, C, Lt) block pads the sublane dim; folding
    # two batch rows into sublanes would recover that DMA efficiency.

    # Per-lane-column VMEM residency across the three streams (src, trg, out).
    col_bytes_vmem = (_padded_col_bytes(C, src.dtype)
                      + _padded_col_bytes(C, trg.dtype)
                      + _padded_col_bytes(C, out_dtype))

    # Generation-aware double-buffered VMEM budget:
    #   v7x (64 MiB/TC)  -> ~32 MiB of stream residency,
    #   v5e/v6e (128 MiB) -> ~56 MiB.
    vmem_capacity = _vmem_capacity_bytes()
    budget = (32 << 20) if vmem_capacity <= (64 << 20) else (56 << 20)

    if l_tile is None:
        # Biggest lane-dense tile whose double-buffered residency fits the budget,
        # never larger than (lane-rounded) L itself.
        l_tile = _round_down(budget // (2 * col_bytes_vmem), 128)
        l_tile = max(128, l_tile)
        l_tile = min(l_tile, _round_up(L, 128))
        # v7x has 2 TensorCores: when N == 1 make sure the "parallel" grid has
        # at least 2 l-tiles so both cores get work (no-op if L <= 128).
        if N == 1 and L > 128:
            l_tile = min(l_tile, max(128, _round_up(pl.cdiv(L, 2), 128)))
    assert l_tile % 128 == 0

    num_l_tiles = pl.cdiv(L, l_tile)   # ragged last tile handled by Pallas masking

    w_col = weight.reshape(C, 1).astype(jnp.float32)     # (C, 1) shared weight column
    b_vec = bias.reshape(1).astype(jnp.float32)          # (1,) -> SMEM scalar

    # Scoped-VMEM limit: double-buffered stream tiles + f32 compute temporaries
    # + slack. Never clamped below the computed need; capped by chip capacity.
    f32_tile_bytes = _round_up(C, 8) * 4 * l_tile
    need = 2 * l_tile * col_bytes_vmem + 3 * f32_tile_bytes + (2 << 20)
    vmem_limit = int(max(min(need, vmem_capacity), 8 << 20))

    out = pl.pallas_call(
        basic_gate_kernel,
        out_shape=jax.ShapeDtypeStruct((N, C, L), out_dtype),
        grid_spec=pltpu.PrefetchScalarGridSpec(
            num_scalar_prefetch=0,
            grid=(N, num_l_tiles),
            in_specs=[
                pl.BlockSpec(memory_space=pltpu.MemorySpace.SMEM),        # bias (scalar)
                pl.BlockSpec((C, 1), lambda n, l: (0, 0)),                # weight (shared)
                pl.BlockSpec((1, C, l_tile), lambda n, l: (n, 0, l)),     # src tile
                pl.BlockSpec((1, C, l_tile), lambda n, l: (n, 0, l)),     # trg tile
            ],
            out_specs=pl.BlockSpec((1, C, l_tile), lambda n, l: (n, 0, l)),
        ),
        compiler_params=pltpu.CompilerParams(
            dimension_semantics=("parallel", "parallel"),
            vmem_limit_bytes=vmem_limit,
        ),
    )(b_vec, w_col, src, trg)

    return out


def basic_gate_ref(src, trg, weight, bias):
    # Plain-JAX reference of the PyTorch forward (Conv1d k=1 == channel dot product).
    w = weight.reshape(-1)                               # (C,)
    logits = jnp.einsum("ncl,c->nl", src, w) + bias[0]   # (N, L)
    g = jax.nn.sigmoid(logits)[:, None, :]               # (N, 1, L)
    return trg * g


if __name__ == "__main__":
    key = jax.random.PRNGKey(0)
    k1, k2, k3, k4 = jax.random.split(key, 4)

    N, C, L = 2, 4, 16  # small shapes consistent with Conv1d gating

    src = jax.random.normal(k1, (N, C, L), dtype=jnp.float32)
    trg = jax.random.normal(k2, (N, C, L), dtype=jnp.float32)

    # Deterministic Conv1d(C, 1, kernel_size=1) parameters: weight (1, C, 1), bias (1,)
    bound = 1.0 / (C ** 0.5)
    weight = jax.random.uniform(k3, (1, C, 1), minval=-bound, maxval=bound,
                                dtype=jnp.float32)
    bias = jax.random.uniform(k4, (1,), minval=-bound, maxval=bound,
                              dtype=jnp.float32)

    out = basic_gate(src, trg, weight, bias)
    out = jax.block_until_ready(out)

    ref = basic_gate_ref(src, trg, weight, bias)
    assert out.shape == (N, C, L)
    assert jnp.allclose(out, ref, atol=1e-5, rtol=1e-5)

    print("KERNEL_OK")
</pallas_src>

<mosaic_0001>
module attributes {stable_mosaic.version = 11 : i64} {
  func.func @basic_gate_kernel(%arg0: i32, %arg1: i32, %arg2: memref<1xf32, #tpu.memory_space<smem>>, %arg3: memref<4x1xf32, #tpu.memory_space<vmem>>, %arg4: memref<1x4x128xf32, #tpu.memory_space<vmem>>, %arg5: memref<1x4x128xf32, #tpu.memory_space<vmem>>, %arg6: memref<1x4x128xf32, #tpu.memory_space<vmem>>) attributes {dimension_semantics = [#tpu.dimension_semantics<parallel>, #tpu.dimension_semantics<parallel>], iteration_bounds = array<i64: 2, 1>, scalar_prefetch = 0 : i64, scratch_operands = 0 : i64, tpu.core_type = #tpu.core_type<tc>, window_params = [{transform_indices = @transform_0, window_bounds = array<i64: 1>}, {pipeline_mode = #tpu.pipeline_mode<synchronous>, transform_indices = @transform_1, window_bounds = array<i64: 4, 1>}, {transform_indices = @transform_2, window_bounds = array<i64: 1, 4, 128>}, {transform_indices = @transform_3, window_bounds = array<i64: 1, 4, 128>}, {transform_indices = @transform_4, window_bounds = array<i64: 1, 4, 128>}]} {
    %c0 = arith.constant 0 : index
    %c0_0 = arith.constant 0 : index
    %c0_1 = arith.constant 0 : index
    %0 = vector.load %arg4[%c0, %c0_0, %c0_1] : memref<1x4x128xf32, #tpu.memory_space<vmem>>, vector<1x4x128xf32>
    %1 = vector.shape_cast %0 : vector<1x4x128xf32> to vector<4x128xf32>
    %c0_2 = arith.constant 0 : index
    %c0_3 = arith.constant 0 : index
    %2 = vector.load %arg3[%c0_2, %c0_3] : memref<4x1xf32, #tpu.memory_space<vmem>>, vector<4x1xf32>
    %3 = vector.broadcast %2 : vector<4x1xf32> to vector<4x128xf32>
    %4 = arith.mulf %1, %3 : vector<4x128xf32>
    %cst = arith.constant dense<0.000000e+00> : vector<128xf32>
    %5 = vector.multi_reduction <add>, %4, %cst [0] : vector<4x128xf32> to vector<128xf32>
    %6 = vector.shape_cast %5 : vector<128xf32> to vector<1x128xf32>
    %c0_4 = arith.constant 0 : index
    %7 = memref.load %arg2[%c0_4] : memref<1xf32, #tpu.memory_space<smem>>
    %8 = vector.broadcast %7 : f32 to vector<1x128xf32>
    %9 = arith.addf %6, %8 : vector<1x128xf32>
    %10 = arith.negf %9 : vector<1x128xf32>
    %11 = math.exp %10 : vector<1x128xf32>
    %cst_5 = arith.constant 1.000000e+00 : f32
    %12 = vector.broadcast %cst_5 : f32 to vector<1x128xf32>
    %13 = arith.addf %12, %11 : vector<1x128xf32>
    %14 = arith.divf %12, %13 : vector<1x128xf32>
    %c0_6 = arith.constant 0 : index
    %c0_7 = arith.constant 0 : index
    %c0_8 = arith.constant 0 : index
    %15 = vector.load %arg5[%c0_6, %c0_7, %c0_8] : memref<1x4x128xf32, #tpu.memory_space<vmem>>, vector<1x4x128xf32>
    %16 = vector.shape_cast %15 : vector<1x4x128xf32> to vector<4x128xf32>
    %17 = vector.broadcast %14 : vector<1x128xf32> to vector<4x128xf32>
    %18 = arith.mulf %16, %17 : vector<4x128xf32>
    %c0_9 = arith.constant 0 : index
    %c0_10 = arith.constant 0 : index
    %c0_11 = arith.constant 0 : index
    %19 = vector.load %arg6[%c0_9, %c0_10, %c0_11] : memref<1x4x128xf32, #tpu.memory_space<vmem>>, vector<1x4x128xf32>
    %20 = vector.shape_cast %19 : vector<1x4x128xf32> to vector<4x128xf32>
    %21 = vector.shape_cast %18 : vector<4x128xf32> to vector<1x4x128xf32>
    tpu.vector_store %arg6[%c0_9, %c0_10, %c0_11], %21 {strides = array<i32>} : memref<1x4x128xf32, #tpu.memory_space<vmem>>, vector<1x4x128xf32>,
    return
  }
  func.func @transform_0(%arg0: i32, %arg1: i32) -> i32 {
    %c0_i32 = arith.constant 0 : i32
    %c0_i32_0 = arith.constant 0 : i32
    return %c0_i32 : i32
  }
  func.func @transform_1(%arg0: i32, %arg1: i32) -> (i32, i32) {
    %c0_i32 = arith.constant 0 : i32
    %c0_i32_0 = arith.constant 0 : i32
    %c0_i32_1 = arith.constant 0 : i32
    return %c0_i32, %c0_i32_0 : i32, i32
  }
  func.func @transform_2(%arg0: i32, %arg1: i32) -> (i32, i32, i32) {
    %c0_i32 = arith.constant 0 : i32
    %c0_i32_0 = arith.constant 0 : i32
    return %arg0, %c0_i32, %arg1 : i32, i32, i32
  }
  func.func @transform_3(%arg0: i32, %arg1: i32) -> (i32, i32, i32) {
    %c0_i32 = arith.constant 0 : i32
    %c0_i32_0 = arith.constant 0 : i32
    return %arg0, %c0_i32, %arg1 : i32, i32, i32
  }
  func.func @transform_4(%arg0: i32, %arg1: i32) -> (i32, i32, i32) {
    %c0_i32 = arith.constant 0 : i32
    %c0_i32_0 = arith.constant 0 : i32
    return %arg0, %c0_i32, %arg1 : i32, i32, i32
  }
}

</mosaic_0001>

<bundles_post_ra>
// kernel: tpu_custom_call.1
= control target key start
LH: loop header
LB: loop body
LE: loop exit
PB: predicated region body
PF: predicated region fallthrough
CT: control target
= control target key end

     0   :  { %s678_s0 = inlined_call_operand.<no memory space> [shape: f32[1], index: 0, kind: input, shape index: {}]   ;;  %s679_s1 = inlined_call_operand.vmem [shape: f32[4,1], index: 1, kind: input, shape index: {}]   ;;  %s680_s2 = inlined_call_operand.vmem [shape: f32[2,4,16], index: 2, kind: input, shape index: {}]   ;;  %s681_s3 = inlined_call_operand.vmem [shape: f32[2,4,16], index: 3, kind: input, shape index: {}]   ;;  %s682_s4 = inlined_call_operand.hbm [shape: f32[2,4,16], index: 4, kind: output, shape index: {}]  }
   0x1   :  { %9 = sst [smem:[#allocation2]] %s678_s0 }
   0x2   :  { %10 = vsyncpa [#allocation4], 0 }
   0x3   :  { %12 = vsyncpa [#allocation4 + $0x1], 0  ;;  %s560_s17 = smov 0   ;;  %s562_s18 = smov 0  }
   0x4   :  { %s564_s19 = smov 0   ;;  %s566_s20 = smov 0  }
   0x5   :  { %s568_s21 = smov 0   ;;  %s570_s22 = smov 0  }
   0x6 LB: > { %s376_s0 = sadd.s32 4294967295, %s528_s22   ;;  %s377_s23 = sadd.s32 4294967294, %s528_s22   ;;  %s528_s22 = sphi %s570_s22, %s18_s22   ;;  %s524_s21 = sphi %s568_s21, %s689_s21   ;;  %s520_s20 = sphi %s566_s20, %s688_s20   ;;  %s516_s19 = sphi %s564_s19, %s687_s19   ;;  %s512_s18 = sphi %s562_s18, %s686_s18   ;;  %s508_s17 = sphi %s560_s17, %s685_s17  }
   0x7   : > { %s30_s24 = sadd.s32 1, %s524_s21  ;;  %s137_s25 = sadd.s32 1, %s516_s19 }
   0x8   : > { %p32_p0 = scmp.ge.s32.totalorder %s30_s24, 2  ;;  %p147_p1 = scmp.ne.s32.totalorder %s516_s19, %s512_s18 }
   0x9   : > { %p148_p2 = scmp.eq.s32.totalorder %s376_s0, 1  ;;  %p153_p3 = scmp.ne.s32.totalorder %s512_s18, %s508_s17 }
   0xa   : > { %s691_s24 = smov (%p32_p0, %s30_s24), 0  ;;  %p154_p5 = scmp.eq.s32.totalorder %s377_s23, 1 }
   0xb   : > { %p600_p4 = por %p148_p2, %p147_p1  ;;  %s132_s27 = ssub.s32 %s524_s21, %s691_s24 }
   0xc   : > { %p380_p6 = scmp.ge.s32.totalorder %s528_s22, 1  ;;  %p135_p7 = scmp.eq.s32.totalorder %s132_s27, 0 }
   0xd   : > { %p607_p8 = por %p154_p5, %p153_p3  ;;  %p198_p9 = scmp.lt.s32.totalorder %s528_s22, 3 }
   0xe   : > { %s613_s29 = scalar_select %p135_p7, %s516_s19, %s137_s25  }
   0xf   : > { %p199_p10 = pnand %p380_p6, %p198_p9 }
  0x10   : > { %v248_v0 = vld [vmem:[%s679_s1] sm:$0xf] (!%p199_p10)  ;;  %v530_v1 = vmov (!%p199_p10), 0   ;;  %p233_p11 = scmp.lt.s32.totalorder (!%p199_p10), %s520_s20, 1  ;;  %vm255_vm0 = vcmask (!%p199_p10), 1043456   ;;  %s263_s11 = sld [smem:[#allocation2]] (!%p199_p10) }
  0x11   : > { %202 = sbr.rel (%p199_p10) target bundleno = 205 (0xcd), region = 36  ;;  %445 = vset.pattern.permute.xlu0 (!%p199_p10), %v530_v1  ;;  %s230_s12 = sand.u32 (!%p199_p10), 1, %s512_s18  }
  0x12   : > { %251 = vperm.xlu0 (!%p199_p10), %445, %v248_v0   ;;  %s381_s13 = sshll.u32 (!%p199_p10), %s230_s12, 2  ;;  %s386_s0 = sshll.u32 (!%p199_p10), %s520_s20, 6 }
  0x13   : > { %s232_s23 = scalar_lea.vmem (!%p199_p10), [#allocation3], %s381_s13  ;;  %s631_s5 = scalar_lea.hbm (!%p199_p10), %s682_s4, %s386_s0 }
  0x14   : > { %s290_s25 = sshll.u32 (!%p199_p10), %s232_s23, 4  ;;  %s633_s25 = int_to_ptr.vmem [resolvable:$true] %s290_s25 }
  0x15   : > { %s450_s8 = scalar_lea.vmem (!%p199_p10), %s633_s25, 64 }
  0x16   : > { %v264_v11 = vstv (!%p199_p10), %s263_s11  ;;  %p451_p12 = scmp.ne.s32.totalorder (!%p199_p10), %s633_s25, %s450_s8 }
  0x18   : > { %s234_s6 = scalar_select %p233_p11, %s520_s20, 1 }
  0x19   : > { %p452_p13 = pnand %p451_p12, %p600_p4  ;;  %s531_s20 = smov [#allocation3]  }
  0x1a   : > { %s382_s7 = sshll.u32 %s234_s6, 2  ;;  %s276_s6 = scalar_lea.sflag [#allocation4], %s230_s12 }
  0x1b   : > { %s239_s10 = scalar_lea.vmem %s680_s2, %s382_s7  ;;  %s246_s16 = scalar_lea.vmem %s681_s3, %s382_s7 }
  0x1c   : > { %v247_v2 = vld [vmem:[%s239_s10] sm:$0xf]  ;;  %p453_p0 = pneg %p452_p13  ;;  %s454_s7 = sshll.u32 %s531_s20, 4  ;;  %s455_s7 = int_to_ptr.vmem [resolvable:$false] %s454_s7 }
  0x1d   : > { %v272_v17 = vld [vmem:[%s246_s16] sm:$0xf]  ;;  %s456_s9 = scalar_lea.vmem %s455_s7, 128  ;;  %p457_p1 = scmp.lt.s32.totalorder %s633_s25, %s455_s7 }
  0x1e   : > { %p458_p2 = scmp.lt.s32.totalorder %s456_s9, %s450_s8 }
  0x20   : > { %p459_p3 = por %p458_p2, %p457_p1 }
  0x22   : > { %p460_p5 = pnand %p459_p3, %p453_p0 }
  0x91   : > { %v252_v3 = vpop.permute.xlu0 %251 }
  0x92   : > { %v254_v4 = vmul.f32 %v252_v3, %v247_v2 }
  0x94   : > { %v256_v5 = vsel %vm255_vm0, %v254_v4, 0.0 }
  0x95   : > { %v257_v6 = vrot.slane %v256_v5, 4 }
  0x97   : > { %v258_v7 = vadd.f32 %v257_v6, %v256_v5 }
  0x99   : > { %v259_v8 = vrot.slane %v258_v7, 2 }
  0x9b   : > { %v260_v9 = vadd.f32 %v259_v8, %v258_v7 }
  0x9d   : > { %v261_v10 = vrot.slane %v260_v9, 1 }
  0x9f   : > { %v262_v12 = vadd.f32 %v261_v10, %v260_v9 }
  0xa1   : > { %v265_v13 = vadd.f32 %v264_v11, %v262_v12 }
  0xa3   : > { %v384_v14 = vmul.f32 -1.442695, %v265_v13 }
  0xa5   : > { %446 = vpow2.f32 %v384_v14 }
  0xaf   : > { %v447_v15 = vpop.eup %446 }
  0xb0   : > { %v269_v16 = vadd.f32 1.0, %v447_v15 }
  0xb2   : > { %448 = vrcp.f32 %v269_v16 }
  0xbc   : > { %v449_v18 = vpop.eup %448 }
  0xbd   : > { %v273_v19 = vmul.f32 %v449_v18, %v272_v17 }
  0xbf   : > { %274 = vst [vmem:[%s232_s23] sm:$0xf] %v273_v19 }
  0xc0   : > { %463 = shalt.err (!%p460_p5)
}
  0xc1   : > { %s464_s10 = scalar_lea.hbm %s631_s5, 64  ;;  %s468_s13 = scalar_lea.hbm %s682_s4, 128 }
  0xc2   : > { %p465_p6 = scmp.ne.s32.totalorder %s631_s5, %s464_s10  ;;  %p469_p10 = scmp.lt.u32.totalorder %s631_s5, %s682_s4 }
  0xc3   : > { %p470_p11 = scmp.lt.u32.totalorder %s468_s13, %s464_s10  ;;  %p472_p13 = scmp.lt.u32.totalorder %s464_s10, %s631_s5 }
  0xc4   : > { %p466_p7 = pnand %p465_p6, %p600_p4 }
  0xc5   : > { %p471_p12 = por %p470_p11, %p469_p10 }
  0xc6   : > { %p467_p9 = pneg %p466_p7 }
  0xc7   : > { %p473_p0 = por %p472_p13, %p471_p12 }
  0xc9   : > { %p474_p1 = pnand %p473_p0, %p467_p9 }
  0xcb   : > { %477 = shalt.err (!%p474_p1)
}
  0xcc   : > { %389 = dma.vmem_to_hbm [thread:$0]  (%p600_p4), %s633_s25, 64, %s631_s5, %s276_s6  }
  0xcd PF: > { %p395_p2 = scmp.ge.s32.totalorder %s528_s22, 2  ;;  %s302_s16 = sand.u32 1, %s508_s17  }
  0xce   : > { %s303_s0 = scalar_lea.sflag [#allocation4], %s302_s16 }
  0xcf   : > { %p392_p3 = pnand %p395_p2, %p607_p8 }
  0xd1   : > { %503 = dma.done.wait (!%p392_p3), %s303_s0, 64  }
  0xd2   : > { %505 = vsyncadd (!%p392_p3), %s303_s0, 4294967232  ;;  %s18_s22 = sadd.s32 1, %s528_s22   ;;  %s685_s17 = smov %s512_s18 }
  0xd3   : > { %p15_p5 = scmp.ge.s32.totalorder %s18_s22, 4   ;;  %s686_s18 = smov %s516_s19 }
  0xd4   : > { %s687_s19 = smov %s613_s29  ;;  %s688_s20 = smov %s524_s21 }
  0xd5   : > { %s689_s21 = smov %s691_s24  ;;  %17 = sbr.rel (!%p15_p5) target bundleno = 6 (0x6), region = 74 }
  0xdc   :  { %308 = vsyncpa [#allocation4], 1 }
  0xdd   :  { %310 = vsyncpa [#allocation4 + $0x1], 1 }

</bundles_post_ra>
